<compile_context>
chip_gen: v5e
topology: v5e:2x2
jax: 0.10.0
libtpu: 0.0.40
codegen_flags: <defaults>
</compile_context>

<pallas_src>
import jax
import jax.numpy as jnp
from jax import lax
from jax.experimental import pallas as pl
from jax.experimental.pallas import tpu as pltpu


# ----------------------------- Pallas kernel -------------------------------
def _make_corr_kernel(M, TM):
    """Per-batch-row sum_{m,n} (1 - 2*C) * P, streamed over M tiles."""
    mask_m = (M % TM) != 0

    def kernel(P_ref, C_ref, out_ref, acc_ref):
        k = pl.program_id(1)

        @pl.when(k == 0)
        def _():
            acc_ref[...] = jnp.zeros_like(acc_ref)

        p = P_ref[...].astype(jnp.float32)           # (TB, TM, N)
        c = C_ref[...].astype(jnp.float32)            # narrow dtypes cast here
        d = (1.0 - 2.0 * c) * p

        if mask_m:
            # Tail M-tile: zero rows past M before accumulation so stale VMEM
            # garbage can never reach the accumulator.
            rows = lax.broadcasted_iota(jnp.int32, d.shape, 1)
            d = jnp.where(rows + k * TM < M, d, 0.0)

        acc_ref[...] += jnp.sum(d, axis=1)            # (TB, N): sublane reduce

        @pl.when(k == pl.num_programs(1) - 1)
        def _():
            # Single cross-lane reduce + narrow (TB, 1) store per batch tile.
            out_ref[...] = jnp.sum(acc_ref[...], axis=-1, keepdims=True)

    return kernel


# --------------------------- tiling / VMEM policy ---------------------------
def _round_down(x, m):
    return (x // m) * m


def _vmem_capacity_bytes():
    try:
        cap = getattr(pltpu.get_tpu_info(), "vmem_capacity_bytes", None)
        if cap:
            return int(cap)
    except Exception:
        pass
    return 64 * 1024 * 1024   # conservative fallback: v7x per-TensorCore VMEM


def _select_tiles(B, M, N, bytes_per_elem, per_step_cap):
    """Pick (TB, TM) for blocks of shape (TB, TM, N).

    Per grid step both inputs together stream TB*TM*N*bytes_per_elem bytes,
    which must fit per_step_cap (x2 for the double-buffered pipeline)."""
    row_bytes = max(1, N * bytes_per_elem)

    # Batch tile: full B for small batches; else a multiple of 8 giving >= 2
    # batch tiles so the "parallel" grid axis can feed both v7x cores.
    if B <= 8:
        TB = B
    else:
        TB = max(8, _round_down(B // 2, 8))

    # Reduction (M) tile: multiple of the sublane alignment, or full M.
    tm_align = 32 if bytes_per_elem < 8 else 8      # sub-32-bit input present
    max_tm = per_step_cap // max(1, TB * row_bytes)
    if max_tm >= M:
        TM = M
    else:
        TM = max(tm_align, _round_down(max_tm, tm_align))
        if TB * TM * row_bytes > per_step_cap:
            # Even the minimal TM overflows: shrink the batch tile instead.
            new_tb = max(1, per_step_cap // (TM * row_bytes))
            if B > 8:
                new_tb = max(8, _round_down(new_tb, 8))
            TB = max(1, min(TB, new_tb))
    return TB, min(TM, M)


def _correspondence_distances(P, C_gt, *, per_step_cap_bytes=None):
    """Per-batch sum_{m,n} (1 - 2*C_gt) * P via Pallas. Returns (B,) float32.

    P, C_gt: (B, M, N); any float / int / bool dtype (cast to f32 in-kernel).
    """
    assert P.ndim == 3 and P.shape == C_gt.shape
    B, M, N = P.shape

    vmem_cap = _vmem_capacity_bytes()
    if per_step_cap_bytes is None:
        # 2 inputs x 2 pipeline buffers -> ~half of VMEM for streaming buffers.
        per_step_cap_bytes = vmem_cap // 4

    bytes_per_elem = P.dtype.itemsize + C_gt.dtype.itemsize
    TB, TM = _select_tiles(B, M, N, bytes_per_elem, per_step_cap_bytes)

    grid_b = pl.cdiv(B, TB)
    grid_m = pl.cdiv(M, TM)
    B_out = grid_b * TB            # only the tiny (B_out, 1) output is padded

    per_step_bytes = TB * TM * N * bytes_per_elem
    need = 2 * per_step_bytes + TB * N * 4 + 4 * B_out + (4 << 20)
    vmem_limit = int(min(vmem_cap, max((vmem_cap * 3) // 4, need)))

    out = pl.pallas_call(
        _make_corr_kernel(M, TM),
        out_shape=jax.ShapeDtypeStruct((B_out, 1), jnp.float32),
        grid=(grid_b, grid_m),
        in_specs=[
            pl.BlockSpec((TB, TM, N), lambda i, k: (i, k, 0)),
            pl.BlockSpec((TB, TM, N), lambda i, k: (i, k, 0)),
        ],
        out_specs=pl.BlockSpec((TB, 1), lambda i, k: (i, 0)),
        scratch_shapes=[pltpu.VMEM((TB, N), jnp.float32)],
        compiler_params=pltpu.CompilerParams(
            dimension_semantics=("parallel", "arbitrary"),
            vmem_limit_bytes=vmem_limit),
    )(P, C_gt)

    return out[:B, 0]


# ------------------------------- JAX glue -----------------------------------
def angle_axis_to_rotation_matrix(angle_axis, eps=1e-6):
    """(B, 3) angle-axis -> (B, 3, 3) rotation matrices (Rodrigues)."""
    theta2 = jnp.sum(angle_axis * angle_axis, axis=-1)            # (B,)
    theta = jnp.sqrt(jnp.maximum(theta2, 1e-20))
    w = angle_axis / theta[:, None]
    wx, wy, wz = w[:, 0], w[:, 1], w[:, 2]
    c, s = jnp.cos(theta), jnp.sin(theta)
    omc = 1.0 - c
    R_full = jnp.stack([
        jnp.stack([c + wx * wx * omc, wx * wy * omc - wz * s, wy * s + wx * wz * omc], axis=-1),
        jnp.stack([wz * s + wx * wy * omc, c + wy * wy * omc, -wx * s + wy * wz * omc], axis=-1),
        jnp.stack([-wy * s + wx * wz * omc, wx * s + wy * wz * omc, c + wz * wz * omc], axis=-1),
    ], axis=-2)
    rx, ry, rz = angle_axis[:, 0], angle_axis[:, 1], angle_axis[:, 2]
    ones = jnp.ones_like(rx)
    R_taylor = jnp.stack([
        jnp.stack([ones, -rz, ry], axis=-1),
        jnp.stack([rz, ones, -rx], axis=-1),
        jnp.stack([-ry, rx, ones], axis=-1),
    ], axis=-2)
    mask = (theta2 > eps)[:, None, None]
    return jnp.where(mask, R_full, R_taylor)


def weighted_total_loss(theta, P, R_gt, t_gt, C_gt, p2d, p3d,
                        num_points_2d, num_points_3d, gamma,
                        max_rotation_angle=1.570796,
                        max_translation_error=1.0):
    b, m, n = P.shape
    del p2d, p3d  # not used by the forward pass

    weights = jnp.tanh(
        2.0 * jnp.minimum(num_points_2d, num_points_3d).astype(jnp.float32)
        / float(min(m, n)))

    # Heavy O(B*M*N) reduction -> Pallas kernel (streams native dtypes/shape).
    corr_b = _correspondence_distances(P, C_gt)
    l_corr = jnp.mean(weights * corr_b)

    if gamma > 0.0:
        # O(B) rotation / translation math in plain JAX (fused by XLA).
        R = angle_axis_to_rotation_matrix(theta[..., :3]).astype(jnp.float32)
        t = theta[..., 3:].astype(jnp.float32)

        eps = 1e-7
        cos_b = jnp.clip(
            0.5 * (jnp.sum(R * R_gt.astype(jnp.float32), axis=(-2, -1)) - 1.0),
            -1.0 + eps, 1.0 - eps)
        rot_b = jnp.minimum(jnp.arccos(cos_b), max_rotation_angle)

        diff = t - t_gt.astype(jnp.float32)
        trans_b = jnp.minimum(jnp.sqrt(jnp.sum(diff * diff, axis=-1)),
                              max_translation_error)

        l_rot = jnp.mean(weights * rot_b)
        l_trans = jnp.mean(weights * trans_b)
        losses = jnp.stack([l_corr, l_rot, l_trans])
        loss = losses[0] + gamma * (losses[1] + losses[2])
    else:
        losses = l_corr.reshape(1)
        loss = losses[0]
    return loss, losses


# Pure-JAX reference (mirrors the PyTorch code) for correctness checks.
def _reference(theta, P, R_gt, t_gt, C_gt, num2d, num3d, gamma,
               max_rotation_angle=1.570796, max_translation_error=1.0):
    b, m, n = P.shape
    weights = jnp.tanh(
        2.0 * jnp.minimum(num2d, num3d).astype(jnp.float32) / float(min(m, n)))
    corr = jnp.sum((1.0 - 2.0 * C_gt.astype(jnp.float32)) * P, axis=(-2, -1))
    R = angle_axis_to_rotation_matrix(theta[..., :3])
    t = theta[..., 3:]
    eps = 1e-7
    cosv = jnp.clip(0.5 * (jnp.sum(R * R_gt, axis=(-2, -1)) - 1.0),
                    -1.0 + eps, 1.0 - eps)
    rot = jnp.minimum(jnp.arccos(cosv), max_rotation_angle)
    trans = jnp.minimum(jnp.linalg.norm(t - t_gt, axis=-1), max_translation_error)
    l0 = jnp.mean(weights * corr)
    l1 = jnp.mean(weights * rot)
    l2 = jnp.mean(weights * trans)
    losses = jnp.stack([l0, l1, l2])
    return losses[0] + gamma * (losses[1] + losses[2]), losses


def _make_inputs(key, B, M, N, c_dtype=jnp.float32):
    ks = jax.random.split(key, 8)
    theta = 0.2 * jax.random.normal(ks[0], (B, 6), dtype=jnp.float32)
    P = jax.random.uniform(ks[1], (B, M, N), dtype=jnp.float32)
    P = P / jnp.sum(P, axis=(-2, -1), keepdims=True)             # probability mass
    C_gt = (jax.random.uniform(ks[2], (B, M, N)) < 0.1).astype(c_dtype)
    aa_gt = 0.3 * jax.random.normal(ks[3], (B, 3), dtype=jnp.float32)
    R_gt = angle_axis_to_rotation_matrix(aa_gt)
    t_gt = 0.5 * jax.random.normal(ks[4], (B, 3), dtype=jnp.float32)
    p2d = jax.random.normal(ks[5], (B, M, 2), dtype=jnp.float32)
    p3d = jax.random.normal(ks[6], (B, N, 3), dtype=jnp.float32)
    num2d = jax.random.randint(ks[7], (B,), 4, M + 1, dtype=jnp.int32)
    num3d = jax.random.randint(jax.random.fold_in(ks[7], 1), (B,), 4, N + 1,
                               dtype=jnp.int32)
    return theta, P, R_gt, t_gt, C_gt, p2d, p3d, num2d, num3d


if __name__ == "__main__":
    root = jax.random.PRNGKey(0)
    k1, k2, k3 = jax.random.split(root, 3)
    gamma = 1.0

    # Case 1: small canonical shapes (B=2, M=N=16); single block, f32 C_gt.
    args = _make_inputs(k1, 2, 16, 16)
    loss, losses = weighted_total_loss(*args, gamma)
    jax.block_until_ready((loss, losses))
    ref_loss, ref_losses = _reference(args[0], args[1], args[2], args[3],
                                      args[4], args[7], args[8], gamma)
    assert jnp.allclose(loss, ref_loss, rtol=1e-5, atol=1e-5), (loss, ref_loss)
    assert jnp.allclose(losses, ref_losses, rtol=1e-5, atol=1e-5), (losses, ref_losses)

    # Also cover the gamma <= 0 branch (correspondence loss only).
    loss0, losses0 = weighted_total_loss(*args, 0.0)
    jax.block_until_ready((loss0, losses0))
    assert losses0.shape == (1,)
    assert jnp.allclose(losses0[0], ref_losses[0], rtol=1e-5, atol=1e-5)
    assert jnp.allclose(loss0, losses0[0])

    # Case 2: B=12 -> batch tiled into two "parallel" tiles (partial edge
    # block, padded (B_out,1) output sliced back), C_gt streamed as int8.
    args2 = _make_inputs(k2, 12, 64, 128, c_dtype=jnp.int8)
    loss2, losses2 = weighted_total_loss(*args2, gamma)
    jax.block_until_ready((loss2, losses2))
    ref_loss2, ref_losses2 = _reference(args2[0], args2[1], args2[2], args2[3],
                                        args2[4], args2[7], args2[8], gamma)
    assert jnp.allclose(loss2, ref_loss2, rtol=1e-5, atol=1e-5), (loss2, ref_loss2)
    assert jnp.allclose(losses2, ref_losses2, rtol=1e-5, atol=1e-5), (losses2, ref_losses2)

    # Case 3: force a tiny per-step budget so the M axis is tiled with a
    # non-dividing tile (exercises the in-kernel tail mask + accumulation).
    _, P3, _, _, C3, _, _, _, _ = _make_inputs(k3, 2, 200, 160)
    corr3 = _correspondence_distances(P3, C3, per_step_cap_bytes=64 * 1024)
    jax.block_until_ready(corr3)
    ref_corr3 = jnp.sum((1.0 - 2.0 * C3) * P3, axis=(-2, -1))
    assert jnp.allclose(corr3, ref_corr3, rtol=1e-5, atol=1e-6), (corr3, ref_corr3)

    print("KERNEL_OK")
</pallas_src>

<mosaic_0001>
module attributes {stable_mosaic.version = 11 : i64} {
  func.func @kernel(%arg0: i32, %arg1: i32, %arg2: memref<2x16x16xf32, #tpu.memory_space<vmem>>, %arg3: memref<2x16x16xf32, #tpu.memory_space<vmem>>, %arg4: memref<2x1xf32, #tpu.memory_space<vmem>>, %arg5: memref<2x16xf32, #tpu.memory_space<vmem>>) attributes {dimension_semantics = [#tpu.dimension_semantics<parallel>, #tpu.dimension_semantics<arbitrary>], iteration_bounds = array<i64: 1, 1>, scalar_prefetch = 0 : i64, scratch_operands = 1 : i64, tpu.core_type = #tpu.core_type<tc>, window_params = [{transform_indices = @transform_0, window_bounds = array<i64: 2, 16, 16>}, {transform_indices = @transform_1, window_bounds = array<i64: 2, 16, 16>}, {transform_indices = @transform_2, window_bounds = array<i64: 2, 1>}]} {
    %c0_i32 = arith.constant 0 : i32
    %0 = arith.cmpi eq, %arg1, %c0_i32 : i32
    %1 = arith.extui %0 : i1 to i32
    %c0_i32_0 = arith.constant 0 : i32
    %2 = arith.cmpi ne, %1, %c0_i32_0 : i32
    scf.if %2 {
      %cst_14 = arith.constant 0.000000e+00 : f32
      %17 = vector.broadcast %cst_14 : f32 to vector<2x16xf32>
      %c0_15 = arith.constant 0 : index
      %c0_16 = arith.constant 0 : index
      %18 = vector.load %arg5[%c0_15, %c0_16] : memref<2x16xf32, #tpu.memory_space<vmem>>, vector<2x16xf32>
      tpu.vector_store %arg5[%c0_15, %c0_16], %17 {strides = array<i32>} : memref<2x16xf32, #tpu.memory_space<vmem>>, vector<2x16xf32>,
    } else {
    }
    %c0 = arith.constant 0 : index
    %c0_1 = arith.constant 0 : index
    %c0_2 = arith.constant 0 : index
    %3 = vector.load %arg2[%c0, %c0_1, %c0_2] : memref<2x16x16xf32, #tpu.memory_space<vmem>>, vector<2x16x16xf32>
    %c0_3 = arith.constant 0 : index
    %c0_4 = arith.constant 0 : index
    %c0_5 = arith.constant 0 : index
    %4 = vector.load %arg3[%c0_3, %c0_4, %c0_5] : memref<2x16x16xf32, #tpu.memory_space<vmem>>, vector<2x16x16xf32>
    %cst = arith.constant 2.000000e+00 : f32
    %5 = vector.broadcast %cst : f32 to vector<2x16x16xf32>
    %6 = arith.mulf %5, %4 : vector<2x16x16xf32>
    %cst_6 = arith.constant 1.000000e+00 : f32
    %7 = vector.broadcast %cst_6 : f32 to vector<2x16x16xf32>
    %8 = arith.subf %7, %6 : vector<2x16x16xf32>
    %9 = arith.mulf %8, %3 : vector<2x16x16xf32>
    %c0_7 = arith.constant 0 : index
    %c0_8 = arith.constant 0 : index
    %10 = vector.load %arg5[%c0_7, %c0_8] : memref<2x16xf32, #tpu.memory_space<vmem>>, vector<2x16xf32>
    %cst_9 = arith.constant dense<0.000000e+00> : vector<2x16xf32>
    %11 = vector.multi_reduction <add>, %9, %cst_9 [1] : vector<2x16x16xf32> to vector<2x16xf32>
    %12 = arith.addf %10, %11 : vector<2x16xf32>
    %c0_10 = arith.constant 0 : index
    %c0_11 = arith.constant 0 : index
    %13 = vector.load %arg5[%c0_10, %c0_11] : memref<2x16xf32, #tpu.memory_space<vmem>>, vector<2x16xf32>
    tpu.vector_store %arg5[%c0_10, %c0_11], %12 {strides = array<i32>} : memref<2x16xf32, #tpu.memory_space<vmem>>, vector<2x16xf32>,
    %c0_i32_12 = arith.constant 0 : i32
    %14 = arith.cmpi eq, %arg1, %c0_i32_12 : i32
    %15 = arith.extui %14 : i1 to i32
    %c0_i32_13 = arith.constant 0 : i32
    %16 = arith.cmpi ne, %15, %c0_i32_13 : i32
    scf.if %16 {
      %c0_14 = arith.constant 0 : index
      %c0_15 = arith.constant 0 : index
      %17 = vector.load %arg5[%c0_14, %c0_15] : memref<2x16xf32, #tpu.memory_space<vmem>>, vector<2x16xf32>
      %cst_16 = arith.constant dense<0.000000e+00> : vector<2xf32>
      %18 = vector.multi_reduction <add>, %17, %cst_16 [1] : vector<2x16xf32> to vector<2xf32>
      %19 = vector.shape_cast %18 : vector<2xf32> to vector<2x1xf32>
      %c0_17 = arith.constant 0 : index
      %c0_18 = arith.constant 0 : index
      %20 = vector.load %arg4[%c0_17, %c0_18] : memref<2x1xf32, #tpu.memory_space<vmem>>, vector<2x1xf32>
      tpu.vector_store %arg4[%c0_17, %c0_18], %19 {strides = array<i32>} : memref<2x1xf32, #tpu.memory_space<vmem>>, vector<2x1xf32>,
    } else {
    }
    return
  }
  func.func @transform_0(%arg0: i32, %arg1: i32) -> (i32, i32, i32) {
    %c0_i32 = arith.constant 0 : i32
    %c0_i32_0 = arith.constant 0 : i32
    return %arg0, %arg1, %c0_i32 : i32, i32, i32
  }
  func.func @transform_1(%arg0: i32, %arg1: i32) -> (i32, i32, i32) {
    %c0_i32 = arith.constant 0 : i32
    %c0_i32_0 = arith.constant 0 : i32
    return %arg0, %arg1, %c0_i32 : i32, i32, i32
  }
  func.func @transform_2(%arg0: i32, %arg1: i32) -> (i32, i32) {
    %c0_i32 = arith.constant 0 : i32
    %c0_i32_0 = arith.constant 0 : i32
    return %arg0, %c0_i32 : i32, i32
  }
}

</mosaic_0001>

<bundles_post_ra>
// kernel: tpu_custom_call.1
= control target key start
LH: loop header
LB: loop body
LE: loop exit
PB: predicated region body
PF: predicated region fallthrough
CT: control target
= control target key end

     0   :  { %7 = vsyncpa [#allocation4], 0  ;;  %s201_s0 = inlined_call_operand.hbm [shape: f32[2,16,16], index: 0, kind: input, shape index: {}]   ;;  %s202_s1 = inlined_call_operand.hbm [shape: f32[2,16,16], index: 1, kind: input, shape index: {}]   ;;  %s203_s2 = inlined_call_operand.vmem [shape: f32[2,1], index: 2, kind: output, shape index: {}]  }
   0x1   :  { %s13_s11 = sshll.u32 %s201_s0, 4  ;;  %s14_s11 = int_to_ptr.hbm [resolvable:$true] %s13_s11 }
   0x2   :  { %8 = vsyncpa [#allocation6], 0  ;;  %s169_s12 = smov [#allocation3]   ;;  %s26_s16 = sshll.u32 %s202_s1, 4  ;;  %s27_s16 = int_to_ptr.hbm [resolvable:$true] %s26_s16 }
   0x3   :  { %s15_s13 = sshll.u32 %s169_s12, 4  ;;  %s170_s17 = smov 128   ;;  %s16_s13 = int_to_ptr.vmem [resolvable:$true] %s15_s13 }
   0x4   :  { %s171_s18 = smov 8   ;;  %s172_s19 = smov [#allocation5]  }
   0x5   :  { %21 = dma.hbm_to_vmem [thread:$0]  %s14_s11, 512, %s16_s13, [#allocation4], %s170_s17, %s170_s17, %s171_s18  }
   0x6   :  { %s28_s20 = sshll.u32 %s172_s19, 4  ;;  %s29_s20 = int_to_ptr.vmem [resolvable:$true] %s28_s20 }
   0x7   :  { %34 = dma.hbm_to_vmem [thread:$0]  %s27_s16, 512, %s29_s20, [#allocation6], %s170_s17, %s170_s17, %s171_s18  }
   0x8   :  { %165 = dma.done.wait [#allocation4], 512  }
   0x9   :  { %166 = vsyncadd [#allocation4], 4294966784 }
   0xa   :  { %167 = dma.done.wait [#allocation6], 512  }
   0xb   :  { %168 = vsyncadd [#allocation6], 4294966784  ;;  %vm47_vm0 = vcmask 123904   ;;  %v173_v0 = vmov 0.0   ;;  %v53_v1 = vld [vmem:[#allocation5] sm:$0xff]  ;;  %v54_v2 = vld [vmem:[#allocation5 + $0x8] sm:$0xff] }
   0xc   :  { %48 = vst.msk [vmem:[#allocation2] sm:$0x3] %vm47_vm0, %v173_v0  ;;  %v55_v3 = vld [vmem:[#allocation5 + $0x10] sm:$0xff]  ;;  %v56_v4 = vld [vmem:[#allocation5 + $0x18] sm:$0xff]  ;;  %v57_v5 = vmul.f32 2.0, %v53_v1  ;;  %v58_v6 = vmul.f32 2.0, %v54_v2 }
   0xd   :  { %v49_v7 = vld [vmem:[#allocation3] sm:$0xff]  ;;  %v50_v8 = vld [vmem:[#allocation3 + $0x8] sm:$0xff]  ;;  %v59_v9 = vmul.f32 2.0, %v55_v3  ;;  %v60_v10 = vmul.f32 2.0, %v56_v4  ;;  %v51_v11 = vld [vmem:[#allocation3 + $0x10] sm:$0xff]  ;;  %vm70_vm1 = vcmask 130048  }
   0xe   :  { %v52_v12 = vld [vmem:[#allocation3 + $0x18] sm:$0xff]  ;;  %v61_v13 = vsub.f32 1.0, %v57_v5  ;;  %v62_v14 = vsub.f32 1.0, %v58_v6  ;;  %vm91_vm2 = vcmask 1041409   ;;  %vm104_vm3 = vcmask 1024  }
   0xf   :  { %v63_v15 = vsub.f32 1.0, %v59_v9  ;;  %v64_v16 = vsub.f32 1.0, %v60_v10 }
  0x10   :  { %v65_v17 = vmul.f32 %v61_v13, %v49_v7  ;;  %v66_v18 = vmul.f32 %v62_v14, %v50_v8 }
  0x11   :  { %v67_v19 = vmul.f32 %v63_v15, %v51_v11  ;;  %v68_v20 = vmul.f32 %v64_v16, %v52_v12 }
  0x12   :  { %v71_v21 = vsel %vm70_vm1, %v65_v17, 0.0  ;;  %v72_v22 = vsel %vm70_vm1, %v66_v18, 0.0 }
  0x13   :  { %v73_v23 = vadd.f32 %v72_v22, %v71_v21  ;;  %v80_v24 = vsel %vm70_vm1, %v67_v19, 0.0  ;;  %v81_v25 = vsel %vm70_vm1, %v68_v20, 0.0  ;;  %v69_v38 = vld [vmem:[#allocation2] sm:$0x3] }
  0x14   :  { %v82_v26 = vadd.f32 %v81_v25, %v80_v24 }
  0x15   :  { %v74_v27 = vrot.slane %v73_v23, 4 }
  0x16   :  { %v83_v28 = vrot.slane %v82_v26, 4 }
  0x17   :  { %v75_v29 = vadd.f32 %v74_v27, %v73_v23 }
  0x18   :  { %v84_v30 = vadd.f32 %v83_v28, %v82_v26 }
  0x19   :  { %v76_v31 = vrot.slane %v75_v29, 2 }
  0x1a   :  { %v85_v32 = vrot.slane %v84_v30, 2 }
  0x1b   :  { %v77_v33 = vadd.f32 %v76_v31, %v75_v29 }
  0x1c   :  { %v86_v34 = vadd.f32 %v85_v32, %v84_v30 }
  0x1d   :  { %v78_v35 = vrot.slane %v77_v33, 1 }
  0x1e   :  { %v87_v36 = vrot.slane %v86_v34, 1 }
  0x1f   :  { %v79_v37 = vadd.f32 %v78_v35, %v77_v33 }
  0x20   :  { %v88_v39 = vadd.f32 %v87_v36, %v86_v34 }
  0x22   :  { %v92_v40 = vsel %vm91_vm2, %v88_v39, %v79_v37 }
  0x23   :  { %v94_v41 = vadd.f32 %v92_v40, %v69_v38 }
  0x25   :  { %96 = vst.msk [vmem:[#allocation2] sm:$0x3] %vm47_vm0, %v94_v41 }
  0x2c   :  { %v100_v42 = vld [vmem:[#allocation2] sm:$0x3] }
  0x2d   :  { %v101_v43 = vsel %vm47_vm0, %v100_v42, 0.0 }
  0x2e   :  { %102 = vadd.xlane.f32.xlu0 %v101_v43 }
  0xa1   :  { %v103_v44 = vpop.xlane.xlu0 %102 }
  0xa2   :  { %105 = vst.msk [vmem:[%s203_s2] sm:$0x3] %vm104_vm3, %v103_v44 }
  0xa3   :  { %110 = vsyncpa [#allocation4], 1 }
  0xa4   :  { %111 = vsyncpa [#allocation6], 1 }

</bundles_post_ra>
